<compile_context>
chip_gen: v5e
topology: v5e:2x2
jax: 0.10.0
libtpu: 0.0.40
codegen_flags: <defaults>
</compile_context>

<pallas_src>
import functools

import jax
import jax.numpy as jnp
import numpy as np
from jax.experimental import pallas as pl
from jax.experimental.pallas import tpu as pltpu

LN_EPS = 1e-12          # eps of the reference custom LayerNorm
MASK_FILL = -10000.0    # masked_fill value in the reference attention


# --------------------------------------------------------------------------- #
# Phase 1: K/V projection into transposed head-major layout (B, D, S) bf16.
# --------------------------------------------------------------------------- #
def _kv_project_kernel(xt_ref, wk_ref, bk_ref, wv_ref, bv_ref, k_ref, v_ref):
    # xt_ref: (D, sc) bf16 (x transposed), wk/wv: (D, D) bf16 (W^T, rows = out feats),
    # bk/bv: (D, 1) f32, outputs: (D, sc) bf16 = head-major K^T / V^T chunk.
    xt = xt_ref[...]
    k_ref[...] = (jnp.dot(wk_ref[...], xt, preferred_element_type=jnp.float32)
                  + bk_ref[...]).astype(jnp.bfloat16)
    v_ref[...] = (jnp.dot(wv_ref[...], xt, preferred_element_type=jnp.float32)
                  + bv_ref[...]).astype(jnp.bfloat16)


# --------------------------------------------------------------------------- #
# Phase 2: attention (per-head loop) + add&LN + F-chunked FFN + add&LN.
# --------------------------------------------------------------------------- #
def _attn_ffn_kernel(
    x_ref,                  # (tq, D)      f32   query tile / residual
    mask_ref,               # (tq, S)      int8  1 = keep, 0 = masked
    k_ref,                  # (H, dh, S)   bf16  transposed head-major K
    v_ref,                  # (H, dh, S)   bf16  transposed head-major V
    wq_ref, bq_ref,         # (H, D, dh) bf16 / (H, 1, dh) f32  (softmax scale folded in)
    wo_ref, bo_ref,         # (D, D) bf16 / (1, D) f32
    g1_ref, be1_ref,        # (1, D) f32
    w1_ref, b1_ref,         # (D, F) bf16 / (1, F) f32
    w2_ref, b2_ref,         # (F, D) bf16 / (1, D) f32
    g2_ref, be2_ref,        # (1, D) f32
    o_ref,                  # (tq, D) f32
    ctx_ref,                # (tq, D) f32 scratch: concatenated per-head contexts
    *, n_head: int, f_chunk: int, exp_bf16: bool,
):
    H = n_head
    tq, D = x_ref.shape
    dh = D // H
    F = w1_ref.shape[1]

    x_q = x_ref[...]                                   # (tq, D) f32 residual
    x_qb = x_q.astype(jnp.bfloat16)
    keep = mask_ref[...] != 0                          # (tq, S) bool (hoisted out of head loop)

    # ---- multi-head attention, one head at a time (q stays in vregs) ----------
    for h in range(H):                                 # static unroll over heads
        q_h = (jnp.dot(x_qb, wq_ref[h], preferred_element_type=jnp.float32)
               + bq_ref[h]).astype(jnp.bfloat16)       # (tq, dh); 1/sqrt(dh) already folded in
        s = jnp.dot(q_h, k_ref[h], preferred_element_type=jnp.float32)   # (tq, S)
        s = jnp.where(keep, s, MASK_FILL)              # exact masked_fill(-10000) semantics
        s = s - jnp.max(s, axis=-1, keepdims=True)
        if exp_bf16:                                   # v6e/v7x: bf16 EUP exp path
            p = jnp.exp(s.astype(jnp.bfloat16))
            denom = jnp.sum(p.astype(jnp.float32), axis=-1, keepdims=True)
        else:                                          # v5e: no bf16 EUP, keep f32
            p = jnp.exp(s)
            denom = jnp.sum(p, axis=-1, keepdims=True)
        inv = pl.reciprocal(denom, approx=True)        # (tq, 1) f32, EUP slot
        # context: (tq, S) x (dh, S) contracting the S (minor) dims -> (tq, dh)
        ctx = jax.lax.dot_general(
            p.astype(jnp.bfloat16), v_ref[h], (((1,), (1,)), ((), ())),
            preferred_element_type=jnp.float32)
        # normalize the small (tq, dh) context instead of the (tq, S) probabilities
        ctx_ref[:, h * dh:(h + 1) * dh] = ctx * inv

    # ---- output projection: head reduction happens inside the MXU ------------
    attn = jnp.dot(ctx_ref[...].astype(jnp.bfloat16), wo_ref[...],
                   preferred_element_type=jnp.float32) + bo_ref[...]

    # dropout1: eval mode -> identity
    # ---- add & LayerNorm 1 ----------------------------------------------------
    h1 = attn + x_q
    mu1 = jnp.mean(h1, axis=-1, keepdims=True)
    var1 = jnp.mean((h1 - mu1) * (h1 - mu1), axis=-1, keepdims=True)
    y1 = (h1 - mu1) * jax.lax.rsqrt(var1 + LN_EPS) * g1_ref[...] + be1_ref[...]

    # ---- position-wise FFN, tiled over the hidden dim F -----------------------
    y1b = y1.astype(jnp.bfloat16)
    acc = jnp.zeros((tq, D), jnp.float32)
    for c in range(F // f_chunk):                      # static unroll over F chunks
        lo = c * f_chunk
        hc = jnp.dot(y1b, w1_ref[:, lo:lo + f_chunk],
                     preferred_element_type=jnp.float32) + b1_ref[:, lo:lo + f_chunk]
        hc = jnp.maximum(hc, 0.0)                      # ReLU
        acc = acc + jnp.dot(hc.astype(jnp.bfloat16), w2_ref[lo:lo + f_chunk, :],
                            preferred_element_type=jnp.float32)
    f_out = acc + b2_ref[...]

    # dropout2: eval mode -> identity
    # ---- add & LayerNorm 2 ----------------------------------------------------
    h2 = f_out + y1
    mu2 = jnp.mean(h2, axis=-1, keepdims=True)
    var2 = jnp.mean((h2 - mu2) * (h2 - mu2), axis=-1, keepdims=True)
    o_ref[...] = (h2 - mu2) * jax.lax.rsqrt(var2 + LN_EPS) * g2_ref[...] + be2_ref[...]

    # TODO(synk): training-mode dropout (p > 0) would need pltpu.prng_seed +
    # pltpu.stateful_bernoulli; this forward matches module.eval() semantics.


# --------------------------------------------------------------------------- #
# Tiling / limits helpers.
# --------------------------------------------------------------------------- #
def _pick_q_tile(S):
    """Largest query tile that divides S while keeping per-head softmax temps small."""
    for t in (512, 256, 128, 64, 32):
        if S % t == 0 and 16 * t * S <= (8 << 20):
            return t
    return S


def _pick_s_chunk(S):
    for c in (1024, 512, 256, 128):
        if S % c == 0:
            return c
    return S


def _pick_f_chunk(F):
    for c in (2048, 1024, 512, 256, 128):
        if F % c == 0:
            return c
    return F


def _vmem_capacity_bytes():
    try:
        return int(pltpu.get_tpu_info().vmem_capacity_bytes)
    except Exception:
        return 64 << 20        # conservative default (v7x per-TensorCore VMEM)


def _vmem_limit_bytes(estimate):
    cap = max(_vmem_capacity_bytes() - (10 << 20), 16 << 20)   # physical minus headroom
    return int(min(max(int(estimate), 32 << 20), cap))


# --------------------------------------------------------------------------- #
# pallas_call builders.
# --------------------------------------------------------------------------- #
def _const_spec(shape, n_grid):
    nd = len(shape)
    if n_grid == 2:
        return pl.BlockSpec(shape, lambda a, b: (0,) * nd)
    return pl.BlockSpec(shape, lambda a: (0,) * nd)


def _build_kv_call(B, S, D, sc):
    in_specs = [
        pl.BlockSpec((None, D, sc), lambda b, s: (b, 0, s)),   # x^T chunk (bf16)
        _const_spec((D, D), 2), _const_spec((D, 1), 2),        # Wk^T, bk
        _const_spec((D, D), 2), _const_spec((D, 1), 2),        # Wv^T, bv
    ]
    out_specs = (pl.BlockSpec((None, D, sc), lambda b, s: (b, 0, s)),
                 pl.BlockSpec((None, D, sc), lambda b, s: (b, 0, s)))
    est = (2 * D * sc * 2                 # x bf16 (double-buffered)
           + 2 * 2 * (D * D * 2)          # Wk^T, Wv^T bf16 (double-buffered)
           + 2 * 2 * (D * 4)              # biases
           + 2 * 2 * (D * sc * 2)         # K/V outputs (double-buffered)
           + 2 * (D * sc * 4))            # f32 matmul results before the bf16 cast
    return pl.pallas_call(
        _kv_project_kernel,
        out_shape=(jax.ShapeDtypeStruct((B, D, S), jnp.bfloat16),
                   jax.ShapeDtypeStruct((B, D, S), jnp.bfloat16)),
        grid=(B, S // sc),
        in_specs=in_specs,
        out_specs=out_specs,
        compiler_params=pltpu.CompilerParams(
            dimension_semantics=("parallel", "parallel"),
            vmem_limit_bytes=_vmem_limit_bytes(int(1.5 * est) + (2 << 20))),
    )


def _build_attn_ffn_call(B, S, D, F, H, tq, fc, exp_bf16):
    dh = D // H
    in_specs = [
        pl.BlockSpec((None, tq, D), lambda b, q: (b, q, 0)),        # x tile (f32)
        pl.BlockSpec((None, tq, S), lambda b, q: (b, q, 0)),        # mask tile (int8)
        pl.BlockSpec((None, H, dh, S), lambda b, q: (b, 0, 0, 0)),  # K (transposed heads)
        pl.BlockSpec((None, H, dh, S), lambda b, q: (b, 0, 0, 0)),  # V (transposed heads)
        _const_spec((H, D, dh), 2), _const_spec((H, 1, dh), 2),     # wq, bq (scale folded)
        _const_spec((D, D), 2), _const_spec((1, D), 2),             # wo, bo
        _const_spec((1, D), 2), _const_spec((1, D), 2),             # gamma1, beta1
        _const_spec((D, F), 2), _const_spec((1, F), 2),             # w1, b1
        _const_spec((F, D), 2), _const_spec((1, D), 2),             # w2, b2
        _const_spec((1, D), 2), _const_spec((1, D), 2),             # gamma2, beta2
    ]
    kernel = functools.partial(_attn_ffn_kernel, n_head=H, f_chunk=fc, exp_bf16=exp_bf16)
    dh_p = max(dh, 128)
    est = (2 * (2 * tq * D * 4 + tq * S)                       # x, out, mask blocks (dbl)
           + 2 * 2 * (D * S * 2)                               # K + V full-seq blocks (dbl)
           + 2 * 2 * (H * D * dh_p + D * D + 2 * D * F)        # bf16 weights (dbl)
           + 2 * 4 * (H * dh_p + 6 * D + F)                    # f32 biases / LN vectors (dbl)
           + tq * D * 4                                        # ctx scratch
           + 4 * 4 * tq * S                                    # live per-head softmax temps
           + 4 * tq * (2 * fc + 8 * D))                        # FFN / LayerNorm temps
    return pl.pallas_call(
        kernel,
        out_shape=jax.ShapeDtypeStruct((B, S, D), jnp.float32),
        grid=(B, S // tq),
        in_specs=in_specs,
        out_specs=pl.BlockSpec((None, tq, D), lambda b, q: (b, q, 0)),
        scratch_shapes=[pltpu.VMEM((tq, D), jnp.float32)],
        compiler_params=pltpu.CompilerParams(
            dimension_semantics=("parallel", "parallel"),
            vmem_limit_bytes=_vmem_limit_bytes(int(1.4 * est) + (2 << 20))),
    )


def _use_bf16_exp():
    """bf16 EUP exp only on v6e/v7x-class chips; older chips keep the f32 path."""
    try:
        kind = jax.devices()[0].device_kind.lower()
    except Exception:
        return False
    return not any(tag in kind for tag in ("v2", "v3", "v4", "v5"))


# --------------------------------------------------------------------------- #
# Host wrapper.
# --------------------------------------------------------------------------- #
def encoder_layer(x, src_mask, params, *, n_head):
    """x: (B, S, D) f32, src_mask: (B, S, S) with 1 = keep / 0 = masked."""
    B, S, D = x.shape
    F = params["w1"].shape[1]
    H = n_head
    assert D % H == 0, "d_model must be divisible by n_head"
    dh = D // H

    tq = _pick_q_tile(S)
    sc = _pick_s_chunk(S)
    fc = _pick_f_chunk(F)
    bf16 = jnp.bfloat16
    f32 = jnp.float32
    scale = 1.0 / float(np.sqrt(dh))

    # ---- host-side weight prep ------------------------------------------------
    # Q: head-split (H, D, dh) with the softmax scale folded into weight AND bias.
    wq_h = (params["wq"] * scale).reshape(D, H, dh).transpose(1, 0, 2).astype(bf16)
    bq_h = (params["bq"] * scale).reshape(H, 1, dh).astype(f32)
    # K/V: transposed weights -> one full-width (D, D) @ (D, S) matmul produces the
    # head-major (dh, S) rows directly (rows of W^T are already grouped by head).
    wk_t = params["wk"].T.astype(bf16)
    wv_t = params["wv"].T.astype(bf16)
    bk_t = params["bk"].reshape(D, 1).astype(f32)
    bv_t = params["bv"].reshape(D, 1).astype(f32)

    x_t = jnp.transpose(x, (0, 2, 1)).astype(bf16)      # (B, D, S) for K/V projection
    x_f32 = x.astype(f32)
    mask_i8 = src_mask.astype(jnp.int8)

    # ---- phase 1: K/V projection ------------------------------------------------
    k_flat, v_flat = _build_kv_call(B, S, D, sc)(x_t, wk_t, bk_t, wv_t, bv_t)
    k_heads = k_flat.reshape(B, H, dh, S)
    v_heads = v_flat.reshape(B, H, dh, S)

    # ---- phase 2: attention + FFN -----------------------------------------------
    attn_call = _build_attn_ffn_call(B, S, D, F, H, tq, fc, _use_bf16_exp())
    return attn_call(
        x_f32, mask_i8, k_heads, v_heads,
        wq_h, bq_h,
        params["wo"].astype(bf16), params["bo"].astype(f32),
        params["gamma1"].astype(f32), params["beta1"].astype(f32),
        params["w1"].astype(bf16), params["b1"].astype(f32),
        params["w2"].astype(bf16), params["b2"].astype(f32),
        params["gamma2"].astype(f32), params["beta2"].astype(f32))


# --------------------------------------------------------------------------- #
# Pure-JAX reference (mirrors the PyTorch forward in eval mode) and test.
# --------------------------------------------------------------------------- #
def encoder_layer_ref(x, src_mask, params, *, n_head):
    B, S, D = x.shape
    dh = D // n_head
    q = x @ params["wq"] + params["bq"]
    k = x @ params["wk"] + params["bk"]
    v = x @ params["wv"] + params["bv"]
    qh = q.reshape(B, S, n_head, dh).transpose(0, 2, 1, 3)
    kh = k.reshape(B, S, n_head, dh).transpose(0, 2, 1, 3)
    vh = v.reshape(B, S, n_head, dh).transpose(0, 2, 1, 3)
    s = jnp.einsum("bhqd,bhkd->bhqk", qh, kh) / jnp.sqrt(jnp.float32(dh))
    s = jnp.where(src_mask[:, None, :, :] == 0, MASK_FILL, s)
    p = jax.nn.softmax(s, axis=-1)
    ctx = jnp.einsum("bhqk,bhkd->bhqd", p, vh).transpose(0, 2, 1, 3).reshape(B, S, D)
    attn = ctx @ params["wo"] + params["bo"]

    def ln(h, g, b):
        mu = jnp.mean(h, -1, keepdims=True)
        var = jnp.mean((h - mu) ** 2, -1, keepdims=True)
        return (h - mu) / jnp.sqrt(var + LN_EPS) * g + b

    y1 = ln(attn + x, params["gamma1"], params["beta1"])
    f = jnp.maximum(y1 @ params["w1"] + params["b1"], 0.0)
    f = f @ params["w2"] + params["b2"]
    return ln(f + y1, params["gamma2"], params["beta2"])


def make_params(key, d_model, ffn_hidden):
    keys = jax.random.split(key, 12)
    scale = 0.02

    def w(k, shape):
        return (scale * jax.random.normal(k, shape)).astype(jnp.float32)

    return {
        "wq": w(keys[0], (d_model, d_model)), "bq": w(keys[1], (1, d_model)),
        "wk": w(keys[2], (d_model, d_model)), "bk": w(keys[3], (1, d_model)),
        "wv": w(keys[4], (d_model, d_model)), "bv": w(keys[5], (1, d_model)),
        "wo": w(keys[6], (d_model, d_model)), "bo": w(keys[7], (1, d_model)),
        "gamma1": jnp.ones((1, d_model), jnp.float32),
        "beta1": jnp.zeros((1, d_model), jnp.float32),
        "w1": w(keys[8], (d_model, ffn_hidden)), "b1": w(keys[9], (1, ffn_hidden)),
        "w2": w(keys[10], (ffn_hidden, d_model)), "b2": w(keys[11], (1, d_model)),
        "gamma2": jnp.ones((1, d_model), jnp.float32),
        "beta2": jnp.zeros((1, d_model), jnp.float32),
    }


if __name__ == "__main__":
    B, S, D, F, H = 2, 8, 32, 64, 4   # batch, seq, d_model, ffn_hidden, n_head
    key = jax.random.PRNGKey(0)
    kx, km, kp = jax.random.split(key, 3)

    x = jax.random.normal(kx, (B, S, D), dtype=jnp.float32)
    # random keep/mask pattern; diagonal always kept so every row has a valid key
    rand = (jax.random.uniform(km, (B, S, S)) > 0.2).astype(jnp.int32)
    eye = jnp.eye(S, dtype=jnp.int32)[None, :, :]
    src_mask = jnp.maximum(rand, eye)

    params = make_params(kp, D, F)

    out = encoder_layer(x, src_mask, params, n_head=H)
    out = jax.block_until_ready(out)

    ref = encoder_layer_ref(x, src_mask, params, n_head=H)
    # Tolerance loosened vs. pure-f32: matmul operands are bf16 (f32 accumulation),
    # exp may run in bf16 on v6e/v7x, and the softmax reciprocal uses the approximate
    # EUP path.
    np.testing.assert_allclose(np.asarray(out), np.asarray(ref), atol=2e-2, rtol=2e-2)

    print("KERNEL_OK")
</pallas_src>

<mosaic_0001>
module attributes {stable_mosaic.version = 11 : i64} {
  func.func @_kv_project_kernel(%arg0: i32, %arg1: i32, %arg2: memref<1x32x8xbf16, #tpu.memory_space<vmem>>, %arg3: memref<32x32xbf16, #tpu.memory_space<vmem>>, %arg4: memref<32x1xf32, #tpu.memory_space<vmem>>, %arg5: memref<32x32xbf16, #tpu.memory_space<vmem>>, %arg6: memref<32x1xf32, #tpu.memory_space<vmem>>, %arg7: memref<1x32x8xbf16, #tpu.memory_space<vmem>>, %arg8: memref<1x32x8xbf16, #tpu.memory_space<vmem>>) attributes {dimension_semantics = [#tpu.dimension_semantics<parallel>, #tpu.dimension_semantics<parallel>], iteration_bounds = array<i64: 2, 1>, scalar_prefetch = 0 : i64, scratch_operands = 0 : i64, tpu.core_type = #tpu.core_type<tc>, window_params = [{transform_indices = @transform_0, window_bounds = array<i64: 1, 32, 8>}, {pipeline_mode = #tpu.pipeline_mode<synchronous>, transform_indices = @transform_1, window_bounds = array<i64: 32, 32>}, {pipeline_mode = #tpu.pipeline_mode<synchronous>, transform_indices = @transform_2, window_bounds = array<i64: 32, 1>}, {pipeline_mode = #tpu.pipeline_mode<synchronous>, transform_indices = @transform_3, window_bounds = array<i64: 32, 32>}, {pipeline_mode = #tpu.pipeline_mode<synchronous>, transform_indices = @transform_4, window_bounds = array<i64: 32, 1>}, {transform_indices = @transform_5, window_bounds = array<i64: 1, 32, 8>}, {transform_indices = @transform_6, window_bounds = array<i64: 1, 32, 8>}]} {
    %c0 = arith.constant 0 : index
    %c0_0 = arith.constant 0 : index
    %c0_1 = arith.constant 0 : index
    %0 = vector.load %arg2[%c0, %c0_0, %c0_1] : memref<1x32x8xbf16, #tpu.memory_space<vmem>>, vector<1x32x8xbf16>
    %1 = vector.shape_cast %0 : vector<1x32x8xbf16> to vector<32x8xbf16>
    %c0_2 = arith.constant 0 : index
    %c0_3 = arith.constant 0 : index
    %2 = vector.load %arg3[%c0_2, %c0_3] : memref<32x32xbf16, #tpu.memory_space<vmem>>, vector<32x32xbf16>
    %cst = arith.constant dense<0.000000e+00> : vector<32x8xf32>
    %3 = tpu.matmul %2, %1, %cst {dimension_numbers = #tpu.dot_dimension_numbers<[1], [0], [0], [1], [0, 0, 1, 1], [], []>} : vector<32x32xbf16>, vector<32x8xbf16>, vector<32x8xf32> -> vector<32x8xf32>
    %c0_4 = arith.constant 0 : index
    %c0_5 = arith.constant 0 : index
    %4 = vector.load %arg4[%c0_4, %c0_5] : memref<32x1xf32, #tpu.memory_space<vmem>>, vector<32x1xf32>
    %5 = vector.broadcast %4 : vector<32x1xf32> to vector<32x8xf32>
    %6 = arith.addf %3, %5 : vector<32x8xf32>
    %7 = arith.truncf %6 : vector<32x8xf32> to vector<32x8xbf16>
    %c0_6 = arith.constant 0 : index
    %c0_7 = arith.constant 0 : index
    %c0_8 = arith.constant 0 : index
    %8 = vector.load %arg7[%c0_6, %c0_7, %c0_8] : memref<1x32x8xbf16, #tpu.memory_space<vmem>>, vector<1x32x8xbf16>
    %9 = vector.shape_cast %8 : vector<1x32x8xbf16> to vector<32x8xbf16>
    %10 = vector.shape_cast %7 : vector<32x8xbf16> to vector<1x32x8xbf16>
    tpu.vector_store %arg7[%c0_6, %c0_7, %c0_8], %10 {strides = array<i32>} : memref<1x32x8xbf16, #tpu.memory_space<vmem>>, vector<1x32x8xbf16>,
    %c0_9 = arith.constant 0 : index
    %c0_10 = arith.constant 0 : index
    %11 = vector.load %arg5[%c0_9, %c0_10] : memref<32x32xbf16, #tpu.memory_space<vmem>>, vector<32x32xbf16>
    %cst_11 = arith.constant dense<0.000000e+00> : vector<32x8xf32>
    %12 = tpu.matmul %11, %1, %cst_11 {dimension_numbers = #tpu.dot_dimension_numbers<[1], [0], [0], [1], [0, 0, 1, 1], [], []>} : vector<32x32xbf16>, vector<32x8xbf16>, vector<32x8xf32> -> vector<32x8xf32>
    %c0_12 = arith.constant 0 : index
    %c0_13 = arith.constant 0 : index
    %13 = vector.load %arg6[%c0_12, %c0_13] : memref<32x1xf32, #tpu.memory_space<vmem>>, vector<32x1xf32>
    %14 = vector.broadcast %13 : vector<32x1xf32> to vector<32x8xf32>
    %15 = arith.addf %12, %14 : vector<32x8xf32>
    %16 = arith.truncf %15 : vector<32x8xf32> to vector<32x8xbf16>
    %c0_14 = arith.constant 0 : index
    %c0_15 = arith.constant 0 : index
    %c0_16 = arith.constant 0 : index
    %17 = vector.load %arg8[%c0_14, %c0_15, %c0_16] : memref<1x32x8xbf16, #tpu.memory_space<vmem>>, vector<1x32x8xbf16>
    %18 = vector.shape_cast %17 : vector<1x32x8xbf16> to vector<32x8xbf16>
    %19 = vector.shape_cast %16 : vector<32x8xbf16> to vector<1x32x8xbf16>
    tpu.vector_store %arg8[%c0_14, %c0_15, %c0_16], %19 {strides = array<i32>} : memref<1x32x8xbf16, #tpu.memory_space<vmem>>, vector<1x32x8xbf16>,
    return
  }
  func.func @transform_0(%arg0: i32, %arg1: i32) -> (i32, i32, i32) {
    %c0_i32 = arith.constant 0 : i32
    %c0_i32_0 = arith.constant 0 : i32
    return %arg0, %c0_i32, %arg1 : i32, i32, i32
  }
  func.func @transform_1(%arg0: i32, %arg1: i32) -> (i32, i32) {
    %c0_i32 = arith.constant 0 : i32
    %c0_i32_0 = arith.constant 0 : i32
    %c0_i32_1 = arith.constant 0 : i32
    return %c0_i32, %c0_i32_0 : i32, i32
  }
  func.func @transform_2(%arg0: i32, %arg1: i32) -> (i32, i32) {
    %c0_i32 = arith.constant 0 : i32
    %c0_i32_0 = arith.constant 0 : i32
    %c0_i32_1 = arith.constant 0 : i32
    return %c0_i32, %c0_i32_0 : i32, i32
  }
  func.func @transform_3(%arg0: i32, %arg1: i32) -> (i32, i32) {
    %c0_i32 = arith.constant 0 : i32
    %c0_i32_0 = arith.constant 0 : i32
    %c0_i32_1 = arith.constant 0 : i32
    return %c0_i32, %c0_i32_0 : i32, i32
  }
  func.func @transform_4(%arg0: i32, %arg1: i32) -> (i32, i32) {
    %c0_i32 = arith.constant 0 : i32
    %c0_i32_0 = arith.constant 0 : i32
    %c0_i32_1 = arith.constant 0 : i32
    return %c0_i32, %c0_i32_0 : i32, i32
  }
  func.func @transform_5(%arg0: i32, %arg1: i32) -> (i32, i32, i32) {
    %c0_i32 = arith.constant 0 : i32
    %c0_i32_0 = arith.constant 0 : i32
    return %arg0, %c0_i32, %arg1 : i32, i32, i32
  }
  func.func @transform_6(%arg0: i32, %arg1: i32) -> (i32, i32, i32) {
    %c0_i32 = arith.constant 0 : i32
    %c0_i32_0 = arith.constant 0 : i32
    return %arg0, %c0_i32, %arg1 : i32, i32, i32
  }
}

</mosaic_0001>

<bundles_post_ra>
// kernel: tpu_custom_call.1
= control target key start
LH: loop header
LB: loop body
LE: loop exit
PB: predicated region body
PF: predicated region fallthrough
CT: control target
= control target key end

     0   :  { %s737_s21 = smov 0   ;;  %s739_s22 = smov 0   ;;  %s834_s0 = inlined_call_operand.vmem [shape: bf16[2,32,8], index: 0, kind: input, shape index: {}]   ;;  %s835_s1 = inlined_call_operand.vmem [shape: bf16[32,32], index: 1, kind: input, shape index: {}]   ;;  %s836_s2 = inlined_call_operand.vmem [shape: f32[32,1], index: 2, kind: input, shape index: {}]   ;;  %s837_s3 = inlined_call_operand.vmem [shape: bf16[32,32], index: 3, kind: input, shape index: {}]   ;;  %s838_s4 = inlined_call_operand.vmem [shape: f32[32,1], index: 4, kind: input, shape index: {}]   ;;  %s839_s5 = inlined_call_operand.vmem [shape: bf16[2,32,8], index: 5, kind: output, shape index: {0}]   ;;  %s840_s6 = inlined_call_operand.vmem [shape: bf16[2,32,8], index: 6, kind: output, shape index: {1}]  }
   0x1   :  { %s741_s23 = smov 0  }
   0x2 LB: > { %s29_s24 = sadd.s32 1, %s695_s22  ;;  %p599_p0 = scmp.ge.s32.totalorder %s699_s23, 1  ;;  %s699_s23 = sphi %s741_s23, %s17_s23   ;;  %s695_s22 = sphi %s739_s22, %s842_s22   ;;  %s691_s21 = sphi %s737_s21, %s841_s21  }
   0x3   : > { %p31_p1 = scmp.ge.s32.totalorder %s29_s24, 2  ;;  %p236_p2 = scmp.lt.s32.totalorder %s699_s23, 3 }
   0x5   : > { %s844_s24 = smov (%p31_p1, %s29_s24), 0  ;;  %p237_p3 = pnand %p599_p0, %p236_p2 }
   0x6   : > { %p280_p4 = scmp.lt.s32.totalorder (!%p237_p3), %s691_s21, 1 }
   0x7   : > { %240 = sbr.rel (%p237_p3) target bundleno = 171 (0xab), region = 40 }
   0xc   : > { %v315_v0 = vld [vmem:[%s836_s2 + $0x10] sm:$0xff]  ;;  %v313_v1 = vld [vmem:[%s836_s2] sm:$0xff]  ;;  %v701_v2 = vmov 0   ;;  %s846_s21 = smov (!%p280_p4, %s691_s21), 1  ;;  %v316_v5 = vld [vmem:[%s836_s2 + $0x18] sm:$0xff]  ;;  %vm359_vm0 = vcmask 261120  }
   0xd   : > { %675 = vset.pattern.permute.xlu1 %v701_v2  ;;  %674 = vset.pattern.permute.xlu0 %v701_v2  ;;  %v398_v3 = vld [vmem:[%s838_s4] sm:$0xff]  ;;  %s764_s7 = sshll.u32 %s846_s21, 4  ;;  %v314_v6 = vld [vmem:[%s836_s2 + $0x8] sm:$0xff]  ;;  %v401_v13 = vld [vmem:[%s838_s4 + $0x18] sm:$0xff]  ;;  %vm389_vm1 = vcmask 60416  }
   0xe   : > { %329 = vperm.xlu1 %675, %v315_v0   ;;  %319 = vperm.xlu0 %674, %v313_v1   ;;  %s287_s10 = scalar_lea.vmem %s834_s0, %s764_s7  ;;  %v641_v8 = vld [vmem:[%s835_s1] sm:$0xff]  ;;  %v642_v9 = vld [vmem:[%s835_s1 + $0x8] sm:$0xff]  ;;  %v400_v14 = vld [vmem:[%s838_s4 + $0x10] sm:$0xff]  ;;  %s801_s11 = scalar_lea.vmem %s839_s5, %s764_s7 }
   0xf   : > { %676 = vset.pattern.permute.xlu2 %v701_v2  ;;  %v640_v4 = vld [vmem:[%s287_s10 + $0x8] sm:$0xff]  ;;  %v639_v7 = vld [vmem:[%s287_s10] sm:$0xff]  ;;  %s807_s14 = scalar_lea.vmem %s840_s6, %s764_s7 }
  0x10   : > { %404 = vperm.xlu2 %676, %v398_v3   ;;  %372 = vmatpush.bf16.msra.mxu0 %v640_v4  ;;  %v399_v10 = vld [vmem:[%s838_s4 + $0x8] sm:$0xff]  ;;  %v643_v11 = vld [vmem:[%s837_s3] sm:$0xff] }
  0x11   : > { %645 = vmatpush.bf16.msra.mxu2 %v640_v4  ;;  %444 = vmatpush.bf16.msra.mxu1 %v640_v4  ;;  %v644_v12 = vld [vmem:[%s837_s3 + $0x8] sm:$0xff] }
  0x12   : > { %647 = vmatpush.bf16.msra.mxu3 %v640_v4 }
  0x14   : > { %373 = vmatpush.bf16.msra.mxu0 %v639_v7 }
  0x15   : > { %646 = vmatpush.bf16.msra.mxu2 %v639_v7  ;;  %445 = vmatpush.bf16.msra.mxu1 %v639_v7 }
  0x16   : > { %334 = vperm.xlu1 %675, %v316_v5   ;;  %324 = vperm.xlu0 %674, %v314_v6  }
  0x17   : > { %648 = vmatpush.bf16.msra.mxu3 %v639_v7  ;;  %622 = vmatmul.msk.bf16.vlgmr.msra.gmra.mxu0 %vm359_vm0, %v641_v8 }
  0x18   : > { %409 = vperm.xlu2 %676, %v399_v10   ;;  %623 = vmatmul.msk.bf16.vlgmr.msra.gmra.mxu2 %vm359_vm0, %v642_v9 }
  0x19   : > { %632 = vmatmul.msk.bf16.vlgmr.msra.gmra.mxu1 %vm359_vm0, %v643_v11 }
  0x1a   : > { %633 = vmatmul.msk.bf16.vlgmr.msra.gmra.mxu3 %vm359_vm0, %v644_v12 }
  0x1e   : > { %419 = vperm.xlu1 %675, %v401_v13   ;;  %414 = vperm.xlu0 %674, %v400_v14  }
  0x6a   : > { %v405_v18 = vpop.permute.xlu2 %404 }
  0x72   : > { %v410_v32 = vpop.permute.xlu2 %409 }
  0x80   : > { %v320_v15 = vpop.permute.xlu0 %319  ;;  %v330_v16 = vpop.permute.xlu1 %329 }
  0x88   : > { %v325_v17 = vpop.permute.xlu0 %324  ;;  %v335_v25 = vpop.permute.xlu1 %334 }
  0x90   : > { %v415_v27 = vpop.permute.xlu0 %414  ;;  %v420_v41 = vpop.permute.xlu1 %419 }
  0x94   : > { %v375_v19 = vpop.f32.mrf.mxu0 }
  0x95   : > { %v376_v20 = vadd.f32 %v375_v19, %v320_v15 }
  0x96   : > { %v447_v21 = vpop.f32.mrf.mxu1 }
  0x97   : > { %v448_v22 = vadd.f32 %v447_v21, %v405_v18  ;;  %v385_v23 = vpack.c.bf16 %v376_v20, %v376_v20 }
  0x99   : > { %v457_v24 = vpack.c.bf16 %v448_v22, %v448_v22  ;;  %390 = vst.msk [vmem:[%s801_s11] sm:$0xf] %vm389_vm1, %v385_v23 }
  0x9b   : > { %461 = vst.msk [vmem:[%s807_s14] sm:$0xf] %vm389_vm1, %v457_v24  ;;  %v380_v26 = vpop.f32.mrf.mxu2 }
  0x9c   : > { %v381_v28 = vadd.f32 %v380_v26, %v330_v16  ;;  %v377_v31 = vpop.f32.mrf.mxu0 }
  0x9d   : > { %v452_v29 = vpop.f32.mrf.mxu3  ;;  %v378_v34 = vadd.f32 %v377_v31, %v325_v17 }
  0x9e   : > { %v453_v30 = vadd.f32 %v452_v29, %v415_v27  ;;  %v387_v33 = vpack.c.bf16 %v381_v28, %v381_v28  ;;  %v449_v35 = vpop.f32.mrf.mxu1 }
  0x9f   : > { %v450_v37 = vadd.f32 %v449_v35, %v410_v32  ;;  %v386_v38 = vpack.c.bf16 %v378_v34, %v378_v34 }
  0xa0   : > { %v459_v36 = vpack.c.bf16 %v453_v30, %v453_v30  ;;  %392 = vst.msk [vmem:[%s801_s11 + $0x8] sm:$0xf] %vm389_vm1, %v387_v33 }
  0xa1   : > { %v458_v39 = vpack.c.bf16 %v450_v37, %v450_v37  ;;  %391 = vst.msk [vmem:[%s801_s11 + $0x4] sm:$0xf] %vm389_vm1, %v386_v38 }
  0xa2   : > { %463 = vst.msk [vmem:[%s807_s14 + $0x8] sm:$0xf] %vm389_vm1, %v459_v36 }
  0xa3   : > { %462 = vst.msk [vmem:[%s807_s14 + $0x4] sm:$0xf] %vm389_vm1, %v458_v39  ;;  %v382_v40 = vpop.f32.mrf.mxu2 }
  0xa4   : > { %v383_v42 = vadd.f32 %v382_v40, %v335_v25 }
  0xa5   : > { %v454_v43 = vpop.f32.mrf.mxu3 }
  0xa6   : > { %v455_v44 = vadd.f32 %v454_v43, %v420_v41  ;;  %v388_v45 = vpack.c.bf16 %v383_v42, %v383_v42 }
  0xa8   : > { %v460_v46 = vpack.c.bf16 %v455_v44, %v455_v44  ;;  %393 = vst.msk [vmem:[%s801_s11 + $0xc] sm:$0xf] %vm389_vm1, %v388_v45 }
  0xaa   : > { %464 = vst.msk [vmem:[%s807_s14 + $0xc] sm:$0xf] %vm389_vm1, %v460_v46 }
  0xab PF: > { %s17_s23 = sadd.s32 1, %s699_s23   ;;  %s841_s21 = smov %s695_s22 }
  0xac   : > { %p14_p5 = scmp.ge.s32.totalorder %s17_s23, 4   ;;  %s842_s22 = smov %s844_s24 }
  0xae   :  { %16 = sbr.rel (!%p14_p5) target bundleno = 2 (0x2), region = 82 }

</bundles_post_ra>
